<compile_context>
chip_gen: v5e
topology: v5e:2x2
jax: 0.10.0
libtpu: 0.0.40
codegen_flags: <defaults>
</compile_context>

<pallas_src>
import jax
import jax.numpy as jnp
from jax import lax
from jax.experimental import pallas as pl
from jax.experimental.pallas import tpu as pltpu


def _round_up(x: int, m: int) -> int:
    return ((x + m - 1) // m) * m


def _focal_loss_kernel(gamma_ref, nvalid_ref, x_ref, lbl_ref, out_ref, acc_ref):
    """One batch tile of the focal loss.

    gamma_ref : SMEM (1,)      f32  focal gamma (scalar prefetch -> no recompile when it changes)
    nvalid_ref: SMEM (1,)      i32  number of real (un-padded) batch rows
    x_ref     : VMEM (TB, C)   f32  logits tile
    lbl_ref   : VMEM (TB, 1)   i32  target class per row
    out_ref   : VMEM (1, 1)    f32  final scalar loss (written on last grid step)
    acc_ref   : VMEM (1, 1)    f32  running sum of per-row cross entropy
    """
    i = pl.program_id(0)

    @pl.when(i == 0)
    def _():
        acc_ref[...] = jnp.zeros_like(acc_ref)

    x = x_ref[...].astype(jnp.float32)                     # (TB, C)
    lbl = lbl_ref[...]                                     # (TB, 1) int32
    tb = x.shape[0]

    # Numerically stable per-row log-sum-exp (exp/log -> EUP slot).
    row_max = jnp.max(x, axis=1, keepdims=True)            # (TB, 1)
    ex = jnp.exp(x - row_max)
    lse = row_max + jnp.log(jnp.sum(ex, axis=1, keepdims=True))   # (TB, 1)

    # logits[row, target[row]] via one-hot compare (no scatter/gather).
    classes = lax.broadcasted_iota(jnp.int32, x.shape, 1)  # (TB, C)
    picked = jnp.sum(jnp.where(classes == lbl, x, 0.0), axis=1, keepdims=True)

    ce = lse - picked                                      # (TB, 1) per-row cross entropy

    # Zero-out rows that exist only because of batch padding.
    rows = lax.broadcasted_iota(jnp.int32, (tb, 1), 0) + i * tb
    ce = jnp.where(rows < nvalid_ref[0], ce, 0.0)

    acc_ref[...] += jnp.sum(ce, axis=0, keepdims=True)     # (1, 1)

    @pl.when(i == pl.num_programs(0) - 1)
    def _():
        n = nvalid_ref[0].astype(jnp.float32)
        gamma = gamma_ref[0]
        logp = acc_ref[...] / n                            # CrossEntropyLoss 'mean' reduction
        p = jnp.exp(-logp)
        one_minus_p = jnp.maximum(1.0 - p, 1e-30)          # CE mean >= 0 so 1-p >= 0
        # (1 - p) ** gamma written as exp(gamma * log(.)) so it lowers for any float gamma;
        # gamma == 0 gives exactly 1.0 thanks to the clamp above.
        focal = jnp.exp(gamma * jnp.log(one_minus_p))
        out_ref[...] = (focal * logp).astype(out_ref.dtype)


def _pick_tile_b(B: int, C: int, vmem_budget_bytes: int = 4 * 1024 * 1024) -> int:
    """Largest batch tile (multiple of 8) whose logits block fits the VMEM budget
    (double-buffering handled by keeping the per-block budget conservative)."""
    max_rows = max(8, vmem_budget_bytes // max(1, C * 4))
    tb = (max_rows // 8) * 8
    tb = max(8, min(tb, 1024))
    return min(tb, _round_up(B, 8))


def focal_loss(logits, target, gamma=0.0, *, tile_b=None):
    """Forward of FocalLoss. logits: (B, C) float, target: (B,) int class indices."""
    B, C = logits.shape
    tb = _pick_tile_b(B, C) if tile_b is None else int(tile_b)
    assert tb % 8 == 0
    tb = min(tb, _round_up(B, 8))
    bp = _round_up(B, tb)                                   # padded batch

    logits_p = jnp.pad(logits.astype(jnp.float32), ((0, bp - B), (0, 0)))
    labels_p = jnp.pad(target.astype(jnp.int32).reshape(B, 1), ((0, bp - B), (0, 0)))

    gamma_arr = jnp.asarray([gamma], dtype=jnp.float32)     # scalar-prefetch -> SMEM
    nvalid_arr = jnp.asarray([B], dtype=jnp.int32)          # scalar-prefetch -> SMEM

    cost = pl.CostEstimate(
        flops=8 * bp * C,                                   # max/sub/sum/compare/select/mul/add
        transcendentals=bp * C + bp + 4,                    # exp per element + log per row + finalize
        bytes_accessed=logits_p.size * 4 + labels_p.size * 4 + 4 + 8,
    )

    out = pl.pallas_call(
        _focal_loss_kernel,
        out_shape=jax.ShapeDtypeStruct((1, 1), jnp.float32),
        grid_spec=pltpu.PrefetchScalarGridSpec(
            num_scalar_prefetch=2,
            grid=(bp // tb,),
            in_specs=[
                pl.BlockSpec((tb, C), lambda i, g, n: (i, 0)),   # logits tile
                pl.BlockSpec((tb, 1), lambda i, g, n: (i, 0)),   # labels tile
            ],
            out_specs=pl.BlockSpec((1, 1), lambda i, g, n: (0, 0)),
            scratch_shapes=[pltpu.VMEM((1, 1), jnp.float32)],    # CE running sum
        ),
        compiler_params=pltpu.CompilerParams(
            # batch axis carries the accumulator -> reduction axis
            dimension_semantics=("arbitrary",),
        ),
        cost_estimate=cost,
    )(gamma_arr, nvalid_arr, logits_p, labels_p)
    return out[0, 0]


def _focal_loss_ref(logits, target, gamma):
    """Pure-JAX reference matching the PyTorch module."""
    lse = jax.nn.logsumexp(logits.astype(jnp.float32), axis=1)
    picked = jnp.take_along_axis(
        logits.astype(jnp.float32), target[:, None].astype(jnp.int32), axis=1
    )[:, 0]
    logp = jnp.mean(lse - picked)                           # CrossEntropyLoss (mean)
    p = jnp.exp(-logp)
    return (1.0 - p) ** gamma * logp


if __name__ == "__main__":
    key = jax.random.PRNGKey(0)
    kx, kt = jax.random.split(key)

    B, C = 8, 16
    logits = jax.random.normal(kx, (B, C), dtype=jnp.float32)
    target = jax.random.randint(kt, (B,), 0, C, dtype=jnp.int32)

    ok = True
    # gamma is a runtime input, so both values reuse the same compiled kernel.
    for gamma in (2.0, 0.0):
        loss = focal_loss(logits, target, gamma)
        loss = jax.block_until_ready(loss)
        ref = _focal_loss_ref(logits, target, gamma)
        ok &= bool(jnp.isfinite(loss))
        ok &= bool(jnp.allclose(loss, ref, rtol=1e-5, atol=1e-5))

    assert ok
    print("KERNEL_OK")
</pallas_src>

<mosaic_0001>
module attributes {stable_mosaic.version = 11 : i64} {
  func.func @_focal_loss_kernel(%arg0: i32, %arg1: memref<1xf32, #tpu.memory_space<smem>>, %arg2: memref<1xi32, #tpu.memory_space<smem>>, %arg3: memref<8x16xf32, #tpu.memory_space<vmem>>, %arg4: memref<8x1xi32, #tpu.memory_space<vmem>>, %arg5: memref<1x1xf32, #tpu.memory_space<vmem>>, %arg6: memref<1x1xf32, #tpu.memory_space<vmem>>) attributes {dimension_semantics = [#tpu.dimension_semantics<arbitrary>], iteration_bounds = array<i64: 1>, scalar_prefetch = 2 : i64, scratch_operands = 1 : i64, tpu.core_type = #tpu.core_type<tc>, window_params = [{transform_indices = @transform_0, window_bounds = array<i64: 8, 16>}, {transform_indices = @transform_1, window_bounds = array<i64: 8, 1>}, {pipeline_mode = #tpu.pipeline_mode<synchronous>, transform_indices = @transform_2, window_bounds = array<i64: 1, 1>}]} {
    %c0_i32 = arith.constant 0 : i32
    %0 = arith.cmpi eq, %arg0, %c0_i32 : i32
    %1 = arith.extui %0 : i1 to i32
    %c0_i32_0 = arith.constant 0 : i32
    %2 = arith.cmpi ne, %1, %c0_i32_0 : i32
    scf.if %2 {
      %cst_16 = arith.constant 0.000000e+00 : f32
      %39 = vector.broadcast %cst_16 : f32 to vector<1x1xf32>
      %c0_17 = arith.constant 0 : index
      %c0_18 = arith.constant 0 : index
      %40 = vector.load %arg6[%c0_17, %c0_18] : memref<1x1xf32, #tpu.memory_space<vmem>>, vector<1x1xf32>
      tpu.vector_store %arg6[%c0_17, %c0_18], %39 {strides = array<i32>} : memref<1x1xf32, #tpu.memory_space<vmem>>, vector<1x1xf32>,
    } else {
    }
    %c0 = arith.constant 0 : index
    %c0_1 = arith.constant 0 : index
    %3 = vector.load %arg3[%c0, %c0_1] : memref<8x16xf32, #tpu.memory_space<vmem>>, vector<8x16xf32>
    %c0_2 = arith.constant 0 : index
    %c0_3 = arith.constant 0 : index
    %4 = vector.load %arg4[%c0_2, %c0_3] : memref<8x1xi32, #tpu.memory_space<vmem>>, vector<8x1xi32>
    %cst = arith.constant dense<0xFF800000> : vector<8xf32>
    %5 = vector.multi_reduction <maximumf>, %3, %cst [1] : vector<8x16xf32> to vector<8xf32>
    %6 = vector.shape_cast %5 : vector<8xf32> to vector<8x1xf32>
    %7 = vector.broadcast %6 : vector<8x1xf32> to vector<8x16xf32>
    %8 = arith.subf %3, %7 : vector<8x16xf32>
    %9 = math.exp %8 : vector<8x16xf32>
    %cst_4 = arith.constant dense<0.000000e+00> : vector<8xf32>
    %10 = vector.multi_reduction <add>, %9, %cst_4 [1] : vector<8x16xf32> to vector<8xf32>
    %11 = vector.shape_cast %10 : vector<8xf32> to vector<8x1xf32>
    %12 = math.log %11 : vector<8x1xf32>
    %13 = arith.addf %6, %12 : vector<8x1xf32>
    %14 = tpu.iota {dimensions = array<i32: 1>} : vector<8x16xi32>
    %15 = vector.broadcast %4 : vector<8x1xi32> to vector<8x16xi32>
    %16 = arith.cmpi eq, %14, %15 : vector<8x16xi32>
    %cst_5 = arith.constant 0.000000e+00 : f32
    %17 = vector.broadcast %cst_5 : f32 to vector<8x16xf32>
    %18 = arith.select %16, %3, %17 : vector<8x16xi1>, vector<8x16xf32>
    %cst_6 = arith.constant dense<0.000000e+00> : vector<8xf32>
    %19 = vector.multi_reduction <add>, %18, %cst_6 [1] : vector<8x16xf32> to vector<8xf32>
    %20 = vector.shape_cast %19 : vector<8xf32> to vector<8x1xf32>
    %21 = arith.subf %13, %20 : vector<8x1xf32>
    %22 = tpu.iota {dimensions = array<i32: 0>} : vector<8x1xi32>
    %c8_i32 = arith.constant 8 : i32
    %23 = arith.muli %arg0, %c8_i32 : i32
    %24 = vector.broadcast %23 : i32 to vector<8x1xi32>
    %25 = arith.addi %22, %24 : vector<8x1xi32>
    %c0_7 = arith.constant 0 : index
    %26 = memref.load %arg2[%c0_7] : memref<1xi32, #tpu.memory_space<smem>>
    %27 = vector.broadcast %26 : i32 to vector<8x1xi32>
    %28 = arith.cmpi slt, %25, %27 : vector<8x1xi32>
    %cst_8 = arith.constant 0.000000e+00 : f32
    %29 = vector.broadcast %cst_8 : f32 to vector<8x1xf32>
    %30 = arith.select %28, %21, %29 : vector<8x1xi1>, vector<8x1xf32>
    %c0_9 = arith.constant 0 : index
    %c0_10 = arith.constant 0 : index
    %31 = vector.load %arg6[%c0_9, %c0_10] : memref<1x1xf32, #tpu.memory_space<vmem>>, vector<1x1xf32>
    %cst_11 = arith.constant dense<0.000000e+00> : vector<1xf32>
    %32 = vector.multi_reduction <add>, %30, %cst_11 [0] : vector<8x1xf32> to vector<1xf32>
    %33 = vector.shape_cast %32 : vector<1xf32> to vector<1x1xf32>
    %34 = arith.addf %31, %33 : vector<1x1xf32>
    %c0_12 = arith.constant 0 : index
    %c0_13 = arith.constant 0 : index
    %35 = vector.load %arg6[%c0_12, %c0_13] : memref<1x1xf32, #tpu.memory_space<vmem>>, vector<1x1xf32>
    tpu.vector_store %arg6[%c0_12, %c0_13], %34 {strides = array<i32>} : memref<1x1xf32, #tpu.memory_space<vmem>>, vector<1x1xf32>,
    %c0_i32_14 = arith.constant 0 : i32
    %36 = arith.cmpi eq, %arg0, %c0_i32_14 : i32
    %37 = arith.extui %36 : i1 to i32
    %c0_i32_15 = arith.constant 0 : i32
    %38 = arith.cmpi ne, %37, %c0_i32_15 : i32
    scf.if %38 {
      %c0_16 = arith.constant 0 : index
      %39 = memref.load %arg2[%c0_16] : memref<1xi32, #tpu.memory_space<smem>>
      %40 = arith.sitofp %39 : i32 to f32
      %c0_17 = arith.constant 0 : index
      %41 = memref.load %arg1[%c0_17] : memref<1xf32, #tpu.memory_space<smem>>
      %c0_18 = arith.constant 0 : index
      %c0_19 = arith.constant 0 : index
      %42 = vector.load %arg6[%c0_18, %c0_19] : memref<1x1xf32, #tpu.memory_space<vmem>>, vector<1x1xf32>
      %43 = vector.broadcast %40 : f32 to vector<1x1xf32>
      %44 = arith.divf %42, %43 : vector<1x1xf32>
      %cst_20 = arith.constant 0.000000e+00 : f32
      %45 = vector.broadcast %cst_20 : f32 to vector<1x1xf32>
      %46 = arith.subf %45, %44 : vector<1x1xf32>
      %47 = math.exp %46 : vector<1x1xf32>
      %cst_21 = arith.constant 1.000000e+00 : f32
      %48 = vector.broadcast %cst_21 : f32 to vector<1x1xf32>
      %49 = arith.subf %48, %47 : vector<1x1xf32>
      %cst_22 = arith.constant 1.000000e-30 : f32
      %50 = vector.broadcast %cst_22 : f32 to vector<1x1xf32>
      %51 = arith.maximumf %49, %50 : vector<1x1xf32>
      %52 = math.log %51 : vector<1x1xf32>
      %53 = vector.broadcast %41 : f32 to vector<1x1xf32>
      %54 = arith.mulf %53, %52 : vector<1x1xf32>
      %55 = math.exp %54 : vector<1x1xf32>
      %56 = arith.mulf %55, %44 : vector<1x1xf32>
      %c0_23 = arith.constant 0 : index
      %c0_24 = arith.constant 0 : index
      %57 = vector.load %arg5[%c0_23, %c0_24] : memref<1x1xf32, #tpu.memory_space<vmem>>, vector<1x1xf32>
      tpu.vector_store %arg5[%c0_23, %c0_24], %56 {strides = array<i32>} : memref<1x1xf32, #tpu.memory_space<vmem>>, vector<1x1xf32>,
    } else {
    }
    return
  }
  func.func @transform_0(%arg0: i32, %arg1: memref<1xf32, #tpu.memory_space<smem>>, %arg2: memref<1xi32, #tpu.memory_space<smem>>) -> (i32, i32) {
    %c0_i32 = arith.constant 0 : i32
    %c0_i32_0 = arith.constant 0 : i32
    return %arg0, %c0_i32 : i32, i32
  }
  func.func @transform_1(%arg0: i32, %arg1: memref<1xf32, #tpu.memory_space<smem>>, %arg2: memref<1xi32, #tpu.memory_space<smem>>) -> (i32, i32) {
    %c0_i32 = arith.constant 0 : i32
    %c0_i32_0 = arith.constant 0 : i32
    return %arg0, %c0_i32 : i32, i32
  }
  func.func @transform_2(%arg0: i32, %arg1: memref<1xf32, #tpu.memory_space<smem>>, %arg2: memref<1xi32, #tpu.memory_space<smem>>) -> (i32, i32) {
    %c0_i32 = arith.constant 0 : i32
    %c0_i32_0 = arith.constant 0 : i32
    %c0_i32_1 = arith.constant 0 : i32
    return %c0_i32, %c0_i32_0 : i32, i32
  }
}

</mosaic_0001>

<bundles_post_ra>
// kernel: tpu_custom_call.1
= control target key start
LH: loop header
LB: loop body
LE: loop exit
PB: predicated region body
PF: predicated region fallthrough
CT: control target
= control target key end

     0   :  { %vm24_vm0 = vcmask 130048   ;;  %s213_s0 = inlined_call_operand.<no memory space> [shape: f32[1], index: 0, kind: input, shape index: {}]   ;;  %s214_s1 = inlined_call_operand.<no memory space> [shape: s32[1], index: 1, kind: input, shape index: {}]   ;;  %s215_s2 = inlined_call_operand.vmem [shape: f32[8,16], index: 2, kind: input, shape index: {}]   ;;  %s216_s3 = inlined_call_operand.vmem [shape: s32[8,1], index: 3, kind: input, shape index: {}]   ;;  %s217_s4 = inlined_call_operand.hbm [shape: f32[1,1], index: 4, kind: output, shape index: {}]  }
   0x1   :  { %v22_v0 = vld [vmem:[%s215_s2] sm:$0xff] }
   0x2   :  { %11 = vsyncpa [#allocation7], 0  ;;  %v25_v1 = vsel %vm24_vm0, %v22_v0, -inf  ;;  %v161_v2 = vmov 0   ;;  %v23_v3 = vld [vmem:[%s216_s3] sm:$0xff]  ;;  %v37_v9 = vlaneseq  ;;  %vm20_vm2 = vcmask 0   ;;  %s71_s19 = scvt.s32.f32 %s214_s1 }
   0x3   :  { %122 = vset.pattern.permute.xlu0 %v161_v2  ;;  %v162_v14 = vmov 0.0   ;;  %v54_v20 = vstv %s214_s1  ;;  %v97_v51 = vstv %s213_s0  ;;  %s163_s23 = smov [#allocation6]   ;;  %s110_s27 = sshll.u32 %s217_s4, 4  ;;  %s111_s27 = int_to_ptr.hbm [resolvable:$true] %s110_s27 }
   0x4   :  { %26 = vmax.xlane.f32.xlu0 %v25_v1  ;;  %v38_v10 = vand.u32 127, %v37_v9  ;;  %21 = vst.msk [vmem:[#allocation2] sm:$0x1] %vm20_vm2, %v162_v14  ;;  %v74_v16 = vstv %s71_s19  ;;  %v49_v18 = vshrl.u32 %v37_v9, 7  ;;  %s108_s24 = sshll.u32 %s163_s23, 4  ;;  %s109_s24 = int_to_ptr.vmem [resolvable:$true] %s108_s24 }
   0x5   :  { %vm80_vm4 = vweird.f32 %v74_v16  ;;  %v86_v36 = vand.u32 2147483648, %v74_v16  ;;  %v84_v39 = vand.u32 2147483647, %v74_v16 }
   0x6   :  { %vm55_vm3 = vcmp.lt.s32.totalorder %v49_v18, %v54_v20 }
   0x7   :  { %v87_v40 = vor.u32 1.1754944e-38, %v86_v36  ;;  %vm85_vm7 = vcmp.eq.f32.partialorder %v84_v39, 8.507059e+37 }
   0xb   :  { %v57_v34 = vld [vmem:[#allocation2] sm:$0x1] }
  0x18   :  { %40 = vperm.xlu0 %122, %v23_v3  }
  0x77   :  { %v27_v4 = vpop.xlane.xlu0 %26 }
  0x78   :  { %v28_v5 = vsub.f32 %v22_v0, %v27_v4 }
  0x7a   :  { %v29_v6 = vmul.f32 1.442695, %v28_v5 }
  0x7c   :  { %123 = vpow2.f32 %v29_v6 }
  0x82   :  { %v124_v7 = vpop.eup %123 }
  0x83   :  { %v31_v8 = vsel %vm24_vm0, %v124_v7, 0.0 }
  0x84   :  { %32 = vadd.xlane.f32.xlu1 %v31_v8 }
  0x8a   :  { %v41_v11 = vpop.permute.xlu0 %40 }
  0x8b   :  { %vm42_vm1 = vcmp.eq.s32.totalorder %v38_v10, %v41_v11 }
  0x8c   :  { %v43_v12 = vsel %vm42_vm1, %v22_v0, 0.0 }
  0x8d   :  { %v44_v13 = vsel %vm24_vm0, %v43_v12, 0.0 }
  0x8e   :  { %45 = vadd.xlane.f32.xlu1 %v44_v13 }
  0xf7   :  { %v33_v15 = vpop.xlane.xlu1 %32 }
  0xf8   :  { %125 = vlog2.f32 %v33_v15 }
  0xf9   :  { %127 = vrcp.f32 %v74_v16 }
  0xfe   :  { %v126_v17 = vpop.eup %125 }
  0xff   :  { %v35_v19 = vmul.f32 0.6931472, %v126_v17  ;;  %v128_v23 = vpop.eup %127 }
 0x100   :  { %v76_v27 = vmul.f32 %v128_v23, %v74_v16  ;;  %vm81_vm5 = vweird.f32 %v128_v23 }
 0x101   :  { %v36_v21 = vadd.f32 %v35_v19, %v27_v4  ;;  %v46_v22 = vpop.xlane.xlu1 %45  ;;  %vm82_vm6 = vmor %vm80_vm4, %vm81_vm5 }
 0x102   :  { %v77_v30 = vsub.f32 1.0, %v76_v27 }
 0x103   :  { %v47_v24 = vsub.f32 %v36_v21, %v46_v22 }
 0x104   :  { %v78_v33 = vmul.f32 %v128_v23, %v77_v30 }
 0x105   :  { %v56_v25 = vsel %vm55_vm3, %v47_v24, 0.0 }
 0x106   :  { %v58_v26 = vrot.slane %v56_v25, 4  ;;  %v79_v38 = vadd.f32 %v128_v23, %v78_v33 }
 0x108   :  { %v59_v28 = vadd.f32 %v58_v26, %v56_v25  ;;  %v83_v41 = vsel %vm82_vm6, %v128_v23, %v79_v38 }
 0x109   :  { %v88_v42 = vsel %vm85_vm7, %v87_v40, %v83_v41 }
 0x10a   :  { %v60_v29 = vrot.slane %v59_v28, 2 }
 0x10c   :  { %v61_v31 = vadd.f32 %v60_v29, %v59_v28 }
 0x10e   :  { %v62_v32 = vrot.slane %v61_v31, 1 }
 0x110   :  { %v63_v35 = vadd.f32 %v62_v32, %v61_v31 }
 0x112   :  { %v64_v37 = vadd.f32 %v63_v35, %v57_v34 }
 0x114   :  { %66 = vst.msk [vmem:[#allocation2] sm:$0x1] %vm20_vm2, %v64_v37 }
 0x11b   :  { %v73_v43 = vld [vmem:[#allocation2] sm:$0x1] }
 0x11c   :  { %v89_v44 = vmul.f32 %v88_v42, %v73_v43 }
 0x11e   :  { %v90_v45 = vsub.f32 0.0, %v89_v44 }
 0x120   :  { %v91_v46 = vmul.f32 1.442695, %v90_v45 }
 0x122   :  { %129 = vpow2.f32 %v91_v46 }
 0x128   :  { %v130_v47 = vpop.eup %129 }
 0x129   :  { %v93_v48 = vsub.f32 1.0, %v130_v47 }
 0x12b   :  { %v94_v49 = vmax.f32 %v93_v48, 1e-30 }
 0x12d   :  { %131 = vlog2.f32 %v94_v49 }
 0x133   :  { %v132_v50 = vpop.eup %131 }
 0x134   :  { %v96_v52 = vmul.f32 0.6931472, %v132_v50 }
 0x136   :  { %v98_v53 = vmul.f32 %v97_v51, %v96_v52 }
 0x138   :  { %v99_v54 = vmul.f32 1.442695, %v98_v53 }
 0x13a   :  { %133 = vpow2.f32 %v99_v54 }
 0x140   :  { %v134_v55 = vpop.eup %133 }
 0x141   :  { %v101_v56 = vmul.f32 %v134_v55, %v89_v44 }
 0x143   :  { %102 = vst.msk [vmem:[#allocation6] sm:$0x1] %vm20_vm2, %v101_v56 }
 0x144   :  { %113 = dma.vmem_to_hbm [thread:$0]  %s109_s24, 16, %s111_s27, [#allocation7]  }
 0x145   :  { %159 = dma.done.wait [#allocation7], 16  }
 0x146   :  { %160 = vsyncadd [#allocation7], 4294967280 }
 0x147   :  { %118 = vsyncpa [#allocation7], 1 }

</bundles_post_ra>
